<compile_context>
chip_gen: v5e
topology: v5e:2x2
jax: 0.10.0
libtpu: 0.0.40
codegen_flags: <defaults>
</compile_context>

<pallas_src>
import jax
import jax.numpy as jnp
from jax.experimental import pallas as pl
from jax.experimental.pallas import tpu as pltpu


def _round_up(x, m):
    return ((x + m - 1) // m) * m


def encoder_kernel(framesT_ref, w1_ref, w2_ref, out_ref):
    # framesT_ref: [1, W, TILE_L]  bf16   (frames^T for one batch / L-tile)
    # w1_ref     : [4N, W]         bf16   (Conv1d(1, 4N, W) weight)
    # w2_ref     : [N, 4N]         bf16   (Conv1d(4N, N, 1) weight)
    # out_ref    : [1, N, TILE_L]  f32
    fT = framesT_ref[0]                                             # [W, TILE_L]
    # h^T = W1 @ frames^T -> [4N, TILE_L]; K=16 contraction (cheap, ~20% of FLOPs).
    h = jnp.dot(w1_ref[...], fT, preferred_element_type=jnp.float32)
    h = jnp.maximum(h, 0.0)                                         # ReLU in f32 (VPU)
    # y^T = W2 @ relu(h)^T -> [N, TILE_L]; K=256, lane-dense MXU output & stores.
    y = jnp.dot(w2_ref[...], h.astype(jnp.bfloat16),
                preferred_element_type=jnp.float32)
    out_ref[0] = jnp.maximum(y, 0.0)                                # ReLU in f32


def encoder_forward(mixture, w1, w2, W=16):
    """mixture: [B, T] float32. w1: [4N, 1, W], w2: [N, 4N, 1].
    Returns mixture_w: [B, N, L] float32 with L = (T - W) // (W // 2) + 1."""
    B, T = mixture.shape
    hop = W // 2
    L = (T - W) // hop + 1
    fourN = w1.shape[0]
    N = w2.shape[0]

    # ---- framing (im2col), gather-free: two hop-shifted contiguous reshapes.
    usable = (L + 1) * hop                       # <= T; == T when (T-W) % hop == 0
    xr = mixture[:, :usable].reshape(B, L + 1, hop).astype(jnp.float32)
    part_a = jnp.swapaxes(xr[:, :L, :], 1, 2)    # [B, hop, L] = frame samples 0..hop-1
    part_b = jnp.swapaxes(xr[:, 1:, :], 1, 2)    # [B, hop, L] = frame samples hop..W-1
    framesT = jnp.concatenate([part_a, part_b], axis=1)             # [B, W, L]

    # ---- pad L to a lane-aligned tile multiple (padded frames are all-zero).
    tile_l = min(512, _round_up(L, 128))
    L_pad = _round_up(L, tile_l)
    if L_pad != L:
        framesT = jnp.pad(framesT, ((0, 0), (0, 0), (0, L_pad - L)))
    framesT = framesT.astype(jnp.bfloat16)

    w1m = w1.reshape(fourN, W).astype(jnp.bfloat16)                 # [4N, W]
    w2m = w2.reshape(N, fourN).astype(jnp.bfloat16)                 # [N, 4N]

    grid = (B, L_pad // tile_l)
    cost = pl.CostEstimate(
        flops=2 * B * L_pad * (W * fourN + fourN * N),
        transcendentals=0,
        bytes_accessed=(framesT.size * 2 + w1m.size * 2 + w2m.size * 2
                        + B * N * L_pad * 4),
    )

    out = pl.pallas_call(
        encoder_kernel,
        out_shape=jax.ShapeDtypeStruct((B, N, L_pad), jnp.float32),
        grid=grid,
        in_specs=[
            pl.BlockSpec((1, W, tile_l), lambda b, i: (b, 0, i)),
            pl.BlockSpec((fourN, W), lambda b, i: (0, 0)),          # VMEM-resident
            pl.BlockSpec((N, fourN), lambda b, i: (0, 0)),          # VMEM-resident
        ],
        out_specs=pl.BlockSpec((1, N, tile_l), lambda b, i: (b, 0, i)),
        compiler_params=pltpu.CompilerParams(
            dimension_semantics=("parallel", "parallel")),
        cost_estimate=cost,
    )(framesT, w1m, w2m)

    return out[:, :, :L]


def encoder_reference(mixture, w1, w2, W=16):
    """Pure-JAX f32 reference of the same forward pass (for validation)."""
    hop = W // 2
    x = mixture[:, None, :]                                         # [B, 1, T]
    h = jax.lax.conv_general_dilated(
        x, w1, window_strides=(hop,), padding="VALID",
        dimension_numbers=("NCH", "OIH", "NCH"))
    h = jnp.maximum(h, 0.0)
    y = jax.lax.conv_general_dilated(
        h, w2, window_strides=(1,), padding="VALID",
        dimension_numbers=("NCH", "OIH", "NCH"))
    return jnp.maximum(y, 0.0)


def encoder_matched_reference(mixture, w1, w2, W=16):
    """Same math as the kernel (bf16 MXU inputs, f32 accumulation) in plain JAX."""
    B, T = mixture.shape
    hop = W // 2
    L = (T - W) // hop + 1
    fourN, N = w1.shape[0], w2.shape[0]
    idx = jnp.arange(L)[:, None] * hop + jnp.arange(W)[None, :]     # [L, W]
    frames = mixture[:, idx].astype(jnp.bfloat16)                   # [B, L, W]
    h = jnp.einsum("blw,cw->blc", frames,
                   w1.reshape(fourN, W).astype(jnp.bfloat16),
                   preferred_element_type=jnp.float32)
    h = jnp.maximum(h, 0.0).astype(jnp.bfloat16)
    y = jnp.einsum("blc,nc->bln", h,
                   w2.reshape(N, fourN).astype(jnp.bfloat16),
                   preferred_element_type=jnp.float32)
    y = jnp.maximum(y, 0.0)
    return jnp.swapaxes(y, 1, 2)                                    # [B, N, L]


if __name__ == "__main__":
    # Module hyperparameters (defaults of Encoder).
    W_ks = 16     # conv kernel size / frame length
    N = 64        # encoder output channels
    fourN = 4 * N

    # Small input consistent with the forward: mixture [B, T].
    B, T = 2, 128  # L = (128 - 16) / 8 + 1 = 15

    key = jax.random.PRNGKey(0)
    k_x, k_w1, k_w2 = jax.random.split(key, 3)

    mixture = jax.random.normal(k_x, (B, T), dtype=jnp.float32)
    # Conv1d weight shapes: [out_ch, in_ch, kernel_size].
    w1 = jax.random.normal(k_w1, (fourN, 1, W_ks), dtype=jnp.float32) * (1.0 / W_ks ** 0.5)
    w2 = jax.random.normal(k_w2, (N, fourN, 1), dtype=jnp.float32) * (1.0 / fourN ** 0.5)

    out = encoder_forward(mixture, w1, w2, W=W_ks)
    out = jax.block_until_ready(out)

    L = (T - W_ks) // (W_ks // 2) + 1
    assert out.shape == (B, N, L), out.shape

    # Tight check against a matched-precision (bf16-input / f32-accum) reference.
    ref_bf16 = encoder_matched_reference(mixture, w1, w2, W=W_ks)
    assert jnp.allclose(out, ref_bf16, atol=5e-3, rtol=5e-3), "mismatch vs matched-precision ref"

    # Loose check against the exact f32 conv reference (bf16 MXU inputs => ~1e-2 dev).
    ref_f32 = encoder_reference(mixture, w1, w2, W=W_ks)
    assert jnp.allclose(out, ref_f32, atol=1e-1, rtol=1e-1), "mismatch vs f32 conv reference"

    print("KERNEL_OK")
</pallas_src>

<mosaic_0001>
module attributes {stable_mosaic.version = 11 : i64} {
  func.func @encoder_kernel(%arg0: i32, %arg1: i32, %arg2: memref<1x16x128xbf16, #tpu.memory_space<vmem>>, %arg3: memref<256x16xbf16, #tpu.memory_space<vmem>>, %arg4: memref<64x256xbf16, #tpu.memory_space<vmem>>, %arg5: memref<1x64x128xf32, #tpu.memory_space<vmem>>) attributes {dimension_semantics = [#tpu.dimension_semantics<parallel>, #tpu.dimension_semantics<parallel>], iteration_bounds = array<i64: 2, 1>, scalar_prefetch = 0 : i64, scratch_operands = 0 : i64, tpu.core_type = #tpu.core_type<tc>, window_params = [{transform_indices = @transform_0, window_bounds = array<i64: 1, 16, 128>}, {pipeline_mode = #tpu.pipeline_mode<synchronous>, transform_indices = @transform_1, window_bounds = array<i64: 256, 16>}, {pipeline_mode = #tpu.pipeline_mode<synchronous>, transform_indices = @transform_2, window_bounds = array<i64: 64, 256>}, {transform_indices = @transform_3, window_bounds = array<i64: 1, 64, 128>}]} {
    %c0 = arith.constant 0 : index
    %c0_0 = arith.constant 0 : index
    %c0_1 = arith.constant 0 : index
    %0 = vector.load %arg2[%c0, %c0_0, %c0_1] : memref<1x16x128xbf16, #tpu.memory_space<vmem>>, vector<1x16x128xbf16>
    %1 = vector.shape_cast %0 : vector<1x16x128xbf16> to vector<16x128xbf16>
    %c0_2 = arith.constant 0 : index
    %c0_3 = arith.constant 0 : index
    %2 = vector.load %arg3[%c0_2, %c0_3] : memref<256x16xbf16, #tpu.memory_space<vmem>>, vector<256x16xbf16>
    %cst = arith.constant dense<0.000000e+00> : vector<256x128xf32>
    %3 = tpu.matmul %2, %1, %cst {dimension_numbers = #tpu.dot_dimension_numbers<[1], [0], [0], [1], [0, 0, 1, 1], [], []>} : vector<256x16xbf16>, vector<16x128xbf16>, vector<256x128xf32> -> vector<256x128xf32>
    %cst_4 = arith.constant 0.000000e+00 : f32
    %4 = vector.broadcast %cst_4 : f32 to vector<256x128xf32>
    %5 = arith.maximumf %3, %4 : vector<256x128xf32>
    %c0_5 = arith.constant 0 : index
    %c0_6 = arith.constant 0 : index
    %6 = vector.load %arg4[%c0_5, %c0_6] : memref<64x256xbf16, #tpu.memory_space<vmem>>, vector<64x256xbf16>
    %7 = arith.truncf %5 : vector<256x128xf32> to vector<256x128xbf16>
    %cst_7 = arith.constant dense<0.000000e+00> : vector<64x128xf32>
    %8 = tpu.matmul %6, %7, %cst_7 {dimension_numbers = #tpu.dot_dimension_numbers<[1], [0], [0], [1], [0, 0, 1, 1], [], []>} : vector<64x256xbf16>, vector<256x128xbf16>, vector<64x128xf32> -> vector<64x128xf32>
    %cst_8 = arith.constant 0.000000e+00 : f32
    %9 = vector.broadcast %cst_8 : f32 to vector<64x128xf32>
    %10 = arith.maximumf %8, %9 : vector<64x128xf32>
    %c0_9 = arith.constant 0 : index
    %c0_10 = arith.constant 0 : index
    %c0_11 = arith.constant 0 : index
    %11 = vector.load %arg5[%c0_9, %c0_10, %c0_11] : memref<1x64x128xf32, #tpu.memory_space<vmem>>, vector<1x64x128xf32>
    %12 = vector.shape_cast %11 : vector<1x64x128xf32> to vector<64x128xf32>
    %13 = vector.shape_cast %10 : vector<64x128xf32> to vector<1x64x128xf32>
    tpu.vector_store %arg5[%c0_9, %c0_10, %c0_11], %13 {strides = array<i32>} : memref<1x64x128xf32, #tpu.memory_space<vmem>>, vector<1x64x128xf32>,
    return
  }
  func.func @transform_0(%arg0: i32, %arg1: i32) -> (i32, i32, i32) {
    %c0_i32 = arith.constant 0 : i32
    %c0_i32_0 = arith.constant 0 : i32
    return %arg0, %c0_i32, %arg1 : i32, i32, i32
  }
  func.func @transform_1(%arg0: i32, %arg1: i32) -> (i32, i32) {
    %c0_i32 = arith.constant 0 : i32
    %c0_i32_0 = arith.constant 0 : i32
    %c0_i32_1 = arith.constant 0 : i32
    return %c0_i32, %c0_i32_0 : i32, i32
  }
  func.func @transform_2(%arg0: i32, %arg1: i32) -> (i32, i32) {
    %c0_i32 = arith.constant 0 : i32
    %c0_i32_0 = arith.constant 0 : i32
    %c0_i32_1 = arith.constant 0 : i32
    return %c0_i32, %c0_i32_0 : i32, i32
  }
  func.func @transform_3(%arg0: i32, %arg1: i32) -> (i32, i32, i32) {
    %c0_i32 = arith.constant 0 : i32
    %c0_i32_0 = arith.constant 0 : i32
    return %arg0, %c0_i32, %arg1 : i32, i32, i32
  }
}

</mosaic_0001>

<bundles_post_ra>
// kernel: tpu_custom_call.1
= control target key start
LH: loop header
LB: loop body
LE: loop exit
PB: predicated region body
PF: predicated region fallthrough
CT: control target
= control target key end

     0   :  { %8 = vsyncpa [#allocation3], 0  ;;  %s1271_s0 = inlined_call_operand.vmem [shape: bf16[2,16,128], index: 0, kind: input, shape index: {}]   ;;  %s1272_s1 = inlined_call_operand.vmem [shape: bf16[256,16], index: 1, kind: input, shape index: {}]   ;;  %s1273_s2 = inlined_call_operand.vmem [shape: bf16[64,256], index: 2, kind: input, shape index: {}]   ;;  %s1274_s3 = inlined_call_operand.hbm [shape: f32[2,64,128], index: 3, kind: output, shape index: {}]  }
   0x1   :  { %10 = vsyncpa [#allocation3 + $0x1], 0  ;;  %s1035_s12 = smov 0   ;;  %s1037_s13 = smov 0  }
   0x2   :  { %s1039_s14 = smov 0   ;;  %s1041_s15 = smov 0  }
   0x3   :  { %s1043_s16 = smov 0   ;;  %s1045_s17 = smov 0  }
   0x4 LB: > { %s718_s18 = sadd.s32 4294967295, %s1011_s17   ;;  %s719_s19 = sadd.s32 4294967294, %s1011_s17   ;;  %s1011_s17 = sphi %s1045_s17, %s16_s17   ;;  %s1007_s16 = sphi %s1043_s16, %s1281_s16   ;;  %s1003_s15 = sphi %s1041_s15, %s1280_s15   ;;  %s999_s14 = sphi %s1039_s14, %s1279_s14   ;;  %s995_s13 = sphi %s1037_s13, %s1278_s13   ;;  %s991_s12 = sphi %s1035_s12, %s1277_s12  }
   0x5   : > { %s28_s20 = sadd.s32 1, %s1007_s16  ;;  %s107_s21 = sadd.s32 1, %s999_s14 }
   0x6   : > { %p30_p0 = scmp.ge.s32.totalorder %s28_s20, 2  ;;  %p117_p1 = scmp.ne.s32.totalorder %s999_s14, %s995_s13 }
   0x7   : > { %p118_p2 = scmp.eq.s32.totalorder %s718_s18, 1  ;;  %p123_p3 = scmp.ne.s32.totalorder %s995_s13, %s991_s12 }
   0x8   : > { %s1283_s20 = smov (%p30_p0, %s28_s20), 0  ;;  %p124_p5 = scmp.eq.s32.totalorder %s719_s19, 1 }
   0x9   : > { %p1075_p4 = por %p118_p2, %p117_p1  ;;  %s102_s23 = ssub.s32 %s1007_s16, %s1283_s20 }
   0xa   : > { %p722_p6 = scmp.ge.s32.totalorder %s1011_s17, 1  ;;  %p105_p7 = scmp.eq.s32.totalorder %s102_s23, 0 }
   0xb   : > { %p1082_p8 = por %p124_p5, %p123_p3  ;;  %p159_p9 = scmp.lt.s32.totalorder %s1011_s17, 3 }
   0xc   : > { %s1088_s25 = scalar_select %p105_p7, %s999_s14, %s107_s21  }
   0xd   : > { %p160_p10 = pnand %p722_p6, %p159_p9 }
   0xe   : > { %p186_p11 = scmp.lt.s32.totalorder (!%p160_p10), %s1003_s15, 1  ;;  %s953_s19 = scalar_lea.hbm (!%p160_p10), %s1274_s3, 128 }
   0xf   : > { %163 = sbr.rel (%p160_p10) target bundleno = 495 (0x1ef), region = 32 }
  0x14   : > { %s187_s26 = scalar_select %p186_p11, %s1003_s15, 1  ;;  %v849_v1 = vld [vmem:[%s1272_s1] sm:$0xff]  ;;  %v858_v2 = vld [vmem:[%s1272_s1 + $0x48] sm:$0xff]  ;;  %vm315_vm0 = vcmask 130048   ;;  %v859_v4 = vld [vmem:[%s1272_s1 + $0x50] sm:$0xff] }
  0x15   : > { %v850_v3 = vld [vmem:[%s1272_s1 + $0x8] sm:$0xff]  ;;  %v851_v5 = vld [vmem:[%s1272_s1 + $0x10] sm:$0xff]  ;;  %v860_v6 = vld [vmem:[%s1272_s1 + $0x58] sm:$0xff] }
  0x16   : > { %s847_s27 = sshll.u32 %s187_s26, 3  ;;  %v852_v7 = vld [vmem:[%s1272_s1 + $0x18] sm:$0xff]  ;;  %v861_v8 = vld [vmem:[%s1272_s1 + $0x60] sm:$0xff]  ;;  %v862_v11 = vld [vmem:[%s1272_s1 + $0x68] sm:$0xff] }
  0x17   : > { %s193_s30 = scalar_lea.vmem %s1271_s0, %s847_s27  ;;  %v856_v9 = vld [vmem:[%s1272_s1 + $0x38] sm:$0xff]  ;;  %v853_v10 = vld [vmem:[%s1272_s1 + $0x20] sm:$0xff]  ;;  %v854_v13 = vld [vmem:[%s1272_s1 + $0x28] sm:$0xff]  ;;  %s183_s27 = sand.u32 1, %s995_s13  }
  0x18   : > { %v848_v0 = vld [vmem:[%s193_s30] sm:$0xff]  ;;  %v863_v14 = vld [vmem:[%s1272_s1 + $0x70] sm:$0xff]  ;;  %v864_v16 = vld [vmem:[%s1272_s1 + $0x78] sm:$0xff]  ;;  %s723_s28 = sshll.u32 %s183_s27, 6  ;;  %s873_s30 = sshll.u32 %s1003_s15, 6 }
  0x19   : > { %371 = vmatpush.bf16.msra.mxu0 %v848_v0  ;;  %875 = vmatpush.bf16.msra.mxu3 %v848_v0  ;;  %v857_v12 = vld [vmem:[%s1272_s1 + $0x40] sm:$0xff]  ;;  %v855_v15 = vld [vmem:[%s1272_s1 + $0x30] sm:$0xff]  ;;  %s1222_s29 = scalar_lea.vmem [#allocation2], %s723_s28  ;;  %s636_s6 = scalar_lea.hbm %s1274_s3, %s873_s30 }
  0x1a   : > { %874 = vmatpush.bf16.msra.mxu1 %v848_v0  ;;  %s637_s7 = sshll.u32 %s1222_s29, 4  ;;  %s639_s8 = sshll.u32 %s636_s6, 4  ;;  %s638_s7 = int_to_ptr.vmem [resolvable:$true] %s637_s7  ;;  %s640_s8 = int_to_ptr.hbm [resolvable:$true] %s639_s8 }
  0x1b   : > { %s624_s9 = scalar_lea.sflag [#allocation3], %s183_s27  ;;  %s947_s10 = sshra.s32 %s640_s8, 4  ;;  %s948_s10 = int_to_ptr.hbm [resolvable:$true] %s947_s10 }
  0x1c   : > { %794 = vmatmul.msk.bf16.vlgmr.msra.gmra.mxu0 %vm315_vm0, %v849_v1  ;;  %803 = vmatmul.msk.bf16.vlgmr.msra.gmra.mxu3 %vm315_vm0, %v858_v2  ;;  %s949_s15 = scalar_lea.hbm %s948_s10, 64  ;;  %p954_p1 = scmp.lt.s32.totalorder %s948_s10, %s1274_s3 }
  0x1d   : > { %801 = vmatmul.msk.bf16.vlgmr.msra.gmra.mxu1 %vm315_vm0, %v856_v9  ;;  %p950_p12 = scmp.ne.s32.totalorder %s948_s10, %s949_s15  ;;  %p955_p2 = scmp.lt.s32.totalorder %s953_s19, %s949_s15 }
  0x1f   : > { %p951_p13 = pnand %p950_p12, %p1075_p4  ;;  %p956_p3 = por %p955_p2, %p954_p1 }
  0x21   : > { %p952_p0 = pneg %p951_p13 }
  0x23   : > { %p957_p5 = pnand %p956_p3, %p952_p0 }
  0x2c   : > { %795 = vmatmul.msk.bf16.gmra.mxu0 %vm315_vm0, %v850_v3  ;;  %804 = vmatmul.msk.bf16.gmra.mxu3 %vm315_vm0, %v859_v4 }
  0x2d   : > { %802 = vmatmul.msk.bf16.gmra.mxu1 %vm315_vm0, %v857_v12 }
  0x3c   : > { %796 = vmatmul.msk.bf16.gmra.mxu0 %vm315_vm0, %v851_v5  ;;  %805 = vmatmul.msk.bf16.gmra.mxu3 %vm315_vm0, %v860_v6 }
  0x4c   : > { %797 = vmatmul.msk.bf16.gmra.mxu0 %vm315_vm0, %v852_v7  ;;  %806 = vmatmul.msk.bf16.gmra.mxu3 %vm315_vm0, %v861_v8 }
  0x5c   : > { %798 = vmatmul.msk.bf16.gmra.mxu0 %vm315_vm0, %v853_v10  ;;  %807 = vmatmul.msk.bf16.gmra.mxu3 %vm315_vm0, %v862_v11 }
  0x6c   : > { %799 = vmatmul.msk.bf16.gmra.mxu0 %vm315_vm0, %v854_v13  ;;  %808 = vmatmul.msk.bf16.gmra.mxu3 %vm315_vm0, %v863_v14 }
  0x7c   : > { %800 = vmatmul.msk.bf16.gmra.mxu0 %vm315_vm0, %v855_v15  ;;  %809 = vmatmul.msk.bf16.gmra.mxu3 %vm315_vm0, %v864_v16 }
  0x99   : > { %v373_v17 = vpop.f32.mrf.mxu0 }
  0x9a   : > { %v453_v19 = vmax.f32 %v373_v17, 0.0  ;;  %v408_v50 = vpop.f32.mrf.mxu1 }
  0x9b   : > { %v467_v54 = vmax.f32 %v408_v50, 0.0 }
  0x9f   : > { %v418_v18 = vpop.f32.mrf.mxu3 }
  0xa0   : > { %v471_v24 = vmax.f32 %v418_v18, 0.0 }
  0xa1   : > { %v375_v20 = vpop.f32.mrf.mxu0 }
  0xa2   : > { %v454_v21 = vmax.f32 %v375_v20, 0.0  ;;  %v410_v53 = vpop.f32.mrf.mxu1 }
  0xa3   : > { %v468_v55 = vmax.f32 %v410_v53, 0.0 }
  0xa4   : > { %v1159_v22 = vpack.c.bf16 %v454_v21, %v453_v19 }
  0xa5   : > { %v500_v57 = vpack.c.bf16 %v468_v55, %v467_v54  ;;  %v871_v54 = vld [vmem:[%s1273_s2 + $0x34] sm:$0xf]  ;;  %v838_v55 = vld [vmem:[%s1273_s2 + $0x38] sm:$0xf0] }
  0xa7   : > { %v420_v23 = vpop.f32.mrf.mxu3  ;;  %549 = vmatpush.bf16.msrb.mxu1 %v500_v57 }
  0xa8   : > { %v472_v25 = vmax.f32 %v420_v23, 0.0 }
  0xa9   : > { %v378_v26 = vpop.f32.mrf.mxu0 }
  0xaa   : > { %v1161_v27 = vpack.c.bf16 %v472_v25, %v471_v24  ;;  %v455_v29 = vmax.f32 %v378_v26, 0.0 }
  0xaf   : > { %v423_v28 = vpop.f32.mrf.mxu3 }
  0xb0   : > { %v473_v34 = vmax.f32 %v423_v28, 0.0 }
  0xb1   : > { %v380_v30 = vpop.f32.mrf.mxu0 }
  0xb2   : > { %v456_v31 = vmax.f32 %v380_v30, 0.0 }
  0xb4   : > { %v1163_v32 = vpack.c.bf16 %v456_v31, %v455_v29  ;;  %v413_v29 = vpop.f32.mrf.mxu1  ;;  %v812_v31 = vld [vmem:[%s1273_s2] sm:$0xf] }
  0xb7   : > { %v425_v33 = vpop.f32.mrf.mxu3 }
  0xb8   : > { %v474_v35 = vmax.f32 %v425_v33, 0.0  ;;  %v866_v33 = vld [vmem:[%s1273_s2 + $0x4] sm:$0xf0] }
  0xb9   : > { %v383_v36 = vpop.f32.mrf.mxu0 }
  0xba   : > { %v1165_v37 = vpack.c.bf16 %v474_v35, %v473_v34  ;;  %v457_v39 = vmax.f32 %v383_v36, 0.0  ;;  %v813_v34 = vor.u32 %v866_v33, %v812_v31  ;;  %v469_v36 = vmax.f32 %v413_v29, 0.0 }
  0xbc   : > { %v415_v35 = vpop.f32.mrf.mxu1 }
  0xbf   : > { %v428_v38 = vpop.f32.mrf.mxu3 }
  0xc0   : > { %v475_v44 = vmax.f32 %v428_v38, 0.0  ;;  %v470_v38 = vmax.f32 %v415_v35, 0.0 }
  0xc1   : > { %v385_v40 = vpop.f32.mrf.mxu0 }
  0xc2   : > { %v458_v41 = vmax.f32 %v385_v40, 0.0  ;;  %v501_v40 = vpack.c.bf16 %v470_v38, %v469_v36 }
  0xc4   : > { %v495_v42 = vpack.c.bf16 %v458_v41, %v457_v39  ;;  %v814_v39 = vld [vmem:[%s1273_s2 + $0x8] sm:$0xf0] }
  0xc7   : > { %v430_v43 = vpop.f32.mrf.mxu3 }
  0xc8   : > { %v476_v45 = vmax.f32 %v430_v43, 0.0  ;;  %v822_v43 = vld [vmem:[%s1273_s2 + $0x18] sm:$0xf0] }
  0xc9   : > { %v388_v46 = vpop.f32.mrf.mxu0 }
  0xca   : > { %v504_v47 = vpack.c.bf16 %v476_v45, %v475_v44  ;;  %v459_v16 = vmax.f32 %v388_v46, 0.0  ;;  %v828_v45 = vld [vmem:[%s1273_s2 + $0x20] sm:$0xf]  ;;  %v870_v46 = vld [vmem:[%s1273_s2 + $0x24] sm:$0xf0] }
  0xcf   : > { %v433_v48 = vpop.f32.mrf.mxu3 }
  0xd0   : > { %v477_v28 = vmax.f32 %v433_v48, 0.0  ;;  %v869_v48 = vld [vmem:[%s1273_s2 + $0x24] sm:$0xf] }
  0xd1   : > { %v390_v49 = vpop.f32.mrf.mxu0 }
  0xd2   : > { %v460_v17 = vmax.f32 %v390_v49, 0.0  ;;  %v830_v49 = vld [vmem:[%s1273_s2 + $0x28] sm:$0xf0] }
  0xd3   : > { %v833_v50 = vor.u32 %v869_v48, %v830_v49 }
  0xd4   : > { %v496_v24 = vpack.c.bf16 %v460_v17, %v459_v16 }
  0xd7   : > { %v435_v51 = vpop.f32.mrf.mxu3 }
  0xd8   : > { %v478_v25 = vmax.f32 %v435_v51, 0.0  ;;  %v836_v51 = vld [vmem:[%s1273_s2 + $0x30] sm:$0xf] }
  0xd9   : > { %v393_v52 = vpop.f32.mrf.mxu0 }
  0xda   : > { %v461_v8 = vmax.f32 %v393_v52, 0.0  ;;  %v505_v30 = vpack.c.bf16 %v478_v25, %v477_v28  ;;  %v872_v52 = vld [vmem:[%s1273_s2 + $0x34] sm:$0xf0] }
  0xdb   : > { %v837_v53 = vor.u32 %v872_v52, %v836_v51 }
  0xdf   : > { %v438_v56 = vpop.f32.mrf.mxu3 }
  0xe0   : > { %v479_v23 = vmax.f32 %v438_v56, 0.0  ;;  %v841_v56 = vor.u32 %v871_v54, %v838_v55 }
  0xe1   : > { %v395_v58 = vpop.f32.mrf.mxu0 }
  0xe2   : > { %v462_v10 = vmax.f32 %v395_v58, 0.0 }
  0xe4   : > { %v497_v19 = vpack.c.bf16 %v462_v10, %v461_v8 }
  0xe7   : > { %v440_v59 = vpop.f32.mrf.mxu3 }
  0xe8   : > { %v480_v20 = vmax.f32 %v440_v59, 0.0 }
  0xe9   : > { %v398_v60 = vpop.f32.mrf.mxu0 }
  0xea   : > { %v463_v5 = vmax.f32 %v398_v60, 0.0  ;;  %v506_v26 = vpack.c.bf16 %v480_v20, %v479_v23 }
  0xef   : > { %v443_v61 = vpop.f32.mrf.mxu3 }
  0xf0   : > { %v481_v18 = vmax.f32 %v443_v61, 0.0 }
  0xf1   : > { %v400_v62 = vpop.f32.mrf.mxu0 }
  0xf2   : > { %v464_v6 = vmax.f32 %v400_v62, 0.0 }
  0xf4   : > { %v498_v13 = vpack.c.bf16 %v464_v6, %v463_v5 }
  0xf7   : > { %v445_v63 = vpop.f32.mrf.mxu3 }
  0xf8   : > { %v482_v14 = vmax.f32 %v445_v63, 0.0 }
  0xf9   : > { %v403_v0 = vpop.f32.mrf.mxu0 }
  0xfa   : > { %v465_v2 = vmax.f32 %v403_v0, 0.0  ;;  %v507_v21 = vpack.c.bf16 %v482_v14, %v481_v18 }
  0xff   : > { %v448_v1 = vpop.f32.mrf.mxu3 }
 0x100   : > { %v483_v11 = vmax.f32 %v448_v1, 0.0 }
 0x101   : > { %v405_v3 = vpop.f32.mrf.mxu0 }
 0x102   : > { %v466_v4 = vmax.f32 %v405_v3, 0.0 }
 0x104   : > { %v499_v7 = vpack.c.bf16 %v466_v4, %v465_v2 }
 0x106   : > { %550 = vmatpush.bf16.msrb.mxu1 %v499_v7 }
 0x107   : > { %v450_v9 = vpop.f32.mrf.mxu3 }
 0x108   : > { %v484_v12 = vmax.f32 %v450_v9, 0.0 }
 0x10a   : > { %551 = vmatpush.bf16.msrb.mxu1 %v498_v13  ;;  %v508_v15 = vpack.c.bf16 %v484_v12, %v483_v11 }
 0x10c   : > { %578 = vmatpush.bf16.msra.mxu2 %v508_v15 }
 0x10e   : > { %552 = vmatpush.bf16.msrb.mxu1 %v497_v19 }
 0x110   : > { %579 = vmatpush.bf16.msra.mxu2 %v507_v21 }
 0x112   : > { %553 = vmatpush.bf16.msrb.mxu1 %v496_v24 }
 0x114   : > { %580 = vmatpush.bf16.msra.mxu2 %v506_v26 }
 0x116   : > { %554 = vmatpush.bf16.msrb.mxu1 %v495_v42  ;;  %v867_v42 = vld [vmem:[%s1273_s2 + $0x14] sm:$0xf] }
 0x117   : > { %v825_v44 = vor.u32 %v867_v42, %v822_v43 }
 0x118   : > { %581 = vmatpush.bf16.msra.mxu2 %v505_v30 }
 0x11a   : > { %555 = vmatpush.bf16.msrb.mxu1 %v1163_v32  ;;  %v865_v32 = vld [vmem:[%s1273_s2 + $0x4] sm:$0xf] }
 0x11b   : > { %v817_v41 = vor.u32 %v865_v32, %v814_v39 }
 0x11c   : > { %582 = vmatpush.bf16.msra.mxu2 %v504_v47  ;;  %v829_v47 = vor.u32 %v870_v46, %v828_v45 }
 0x11e   : > { %556 = vmatpush.bf16.msrb.mxu1 %v1159_v22  ;;  %v820_v22 = vld [vmem:[%s1273_s2 + $0x10] sm:$0xf] }
 0x120   : > { %583 = vmatpush.bf16.msra.mxu2 %v1165_v37  ;;  %v868_v37 = vld [vmem:[%s1273_s2 + $0x14] sm:$0xf0] }
 0x121   : > { %557 = vmatmul.bf16.vlgmr.msrb.gmra.mxu1 %v813_v34 }
 0x124   : > { %584 = vmatpush.bf16.msra.mxu2 %v1161_v27  ;;  %v821_v27 = vor.u32 %v868_v37, %v820_v22 }
 0x128   : > { %585 = vmatpush.bf16.msra.mxu2 %v501_v40 }
 0x12b   : > { %586 = vmatmul.bf16.vlgmr.msra.gmra.mxu2 %v817_v41 }
 0x131   : > { %562 = vmatmul.bf16.gmra.mxu1 %v821_v27 }
 0x13b   : > { %591 = vmatmul.bf16.gmra.mxu2 %v825_v44 }
 0x141   : > { %567 = vmatmul.bf16.gmra.mxu1 %v829_v47 }
 0x14b   : > { %596 = vmatmul.bf16.gmra.mxu2 %v833_v50 }
 0x151   : > { %572 = vmatmul.bf16.gmra.mxu1 %v837_v53 }
 0x15b   : > { %601 = vmatmul.bf16.gmra.mxu2 %v841_v56 }
 0x19e   : > { %v558_v57 = vpop.f32.mrf.mxu1 }
 0x1a6   : > { %v560_v58 = vpop.f32.mrf.mxu1 }
 0x1ae   : > { %v587_v59 = vpop.f32.mrf.mxu2  ;;  %v563_v62 = vpop.f32.mrf.mxu1 }
 0x1af   : > { %v588_v60 = vadd.f32 %v587_v59, %v558_v57 }
 0x1b1   : > { %v607_v61 = vmax.f32 %v588_v60, 0.0 }
 0x1b3   : > { %615 = vst [vmem:[%s1222_s29] sm:$0xff] %v607_v61 }
 0x1b6   : > { %v589_v63 = vpop.f32.mrf.mxu2  ;;  %v565_v2 = vpop.f32.mrf.mxu1 }
 0x1b7   : > { %v590_v0 = vadd.f32 %v589_v63, %v560_v58 }
 0x1b9   : > { %v608_v1 = vmax.f32 %v590_v0, 0.0 }
 0x1bb   : > { %616 = vst [vmem:[%s1222_s29 + $0x8] sm:$0xff] %v608_v1 }
 0x1be   : > { %v592_v3 = vpop.f32.mrf.mxu2  ;;  %v568_v8 = vpop.f32.mrf.mxu1 }
 0x1bf   : > { %v593_v4 = vadd.f32 %v592_v3, %v563_v62 }
 0x1c1   : > { %v609_v5 = vmax.f32 %v593_v4, 0.0 }
 0x1c3   : > { %617 = vst [vmem:[%s1222_s29 + $0x10] sm:$0xff] %v609_v5 }
 0x1c6   : > { %v594_v6 = vpop.f32.mrf.mxu2  ;;  %v570_v13 = vpop.f32.mrf.mxu1 }
 0x1c7   : > { %v595_v7 = vadd.f32 %v594_v6, %v565_v2 }
 0x1c9   : > { %v610_v9 = vmax.f32 %v595_v7, 0.0 }
 0x1cb   : > { %618 = vst [vmem:[%s1222_s29 + $0x18] sm:$0xff] %v610_v9 }
 0x1ce   : > { %v597_v10 = vpop.f32.mrf.mxu2  ;;  %v573_v17 = vpop.f32.mrf.mxu1 }
 0x1cf   : > { %v598_v11 = vadd.f32 %v597_v10, %v568_v8 }
 0x1d1   : > { %v611_v12 = vmax.f32 %v598_v11, 0.0 }
 0x1d3   : > { %619 = vst [vmem:[%s1222_s29 + $0x20] sm:$0xff] %v611_v12 }
 0x1d6   : > { %v599_v14 = vpop.f32.mrf.mxu2  ;;  %v575_v21 = vpop.f32.mrf.mxu1 }
 0x1d7   : > { %v600_v15 = vadd.f32 %v599_v14, %v570_v13 }
 0x1d9   : > { %v612_v16 = vmax.f32 %v600_v15, 0.0 }
 0x1db   : > { %620 = vst [vmem:[%s1222_s29 + $0x28] sm:$0xff] %v612_v16 }
 0x1de   : > { %v602_v18 = vpop.f32.mrf.mxu2 }
 0x1df   : > { %v603_v19 = vadd.f32 %v602_v18, %v573_v17 }
 0x1e1   : > { %v613_v20 = vmax.f32 %v603_v19, 0.0 }
 0x1e3   : > { %621 = vst [vmem:[%s1222_s29 + $0x30] sm:$0xff] %v613_v20 }
 0x1e6   : > { %v604_v23 = vpop.f32.mrf.mxu2 }
 0x1e7   : > { %v605_v24 = vadd.f32 %v604_v23, %v575_v21 }
 0x1e9   : > { %v614_v25 = vmax.f32 %v605_v24, 0.0 }
 0x1eb   : > { %622 = vst [vmem:[%s1222_s29 + $0x38] sm:$0xff] %v614_v25 }
 0x1ec   : > { %960 = shalt.err (!%p957_p5)
}
 0x1ed   : > { %s1013_s26 = smov 128   ;;  %s1014_s27 = smov 8  }
 0x1ee   : > { %876 = dma.vmem_to_hbm [thread:$0]  (%p1075_p4), %s638_s7, 1024, %s640_s8, %s624_s9, %s1013_s26, %s1013_s26, %s1014_s27  }
 0x1ef PF: > { %p882_p6 = scmp.ge.s32.totalorder %s1011_s17, 2  ;;  %s654_s28 = sand.u32 1, %s991_s12  }
 0x1f0   : > { %s655_s29 = scalar_lea.sflag [#allocation3], %s654_s28 }
 0x1f1   : > { %p879_p7 = pnand %p882_p6, %p1082_p8 }
 0x1f3   : > { %p880_p9 = pneg %p879_p7 }
 0x1f5   : > { %986 = dma.done.wait (%p880_p9), %s655_s29, 1024  }
 0x1f6   : > { %988 = vsyncadd (%p880_p9), %s655_s29, 4294966272  ;;  %s16_s17 = sadd.s32 1, %s1011_s17   ;;  %s1277_s12 = smov %s995_s13 }
 0x1f7   : > { %p13_p10 = scmp.ge.s32.totalorder %s16_s17, 4   ;;  %s1278_s13 = smov %s999_s14 }
 0x1f8   : > { %s1279_s14 = smov %s1088_s25  ;;  %s1280_s15 = smov %s1007_s16 }
 0x1f9   : > { %s1281_s16 = smov %s1283_s20  ;;  %15 = sbr.rel (!%p13_p10) target bundleno = 4 (0x4), region = 67 }
 0x1fe   :  { %661 = vsyncpa [#allocation3], 1 }
 0x1ff   :  { %663 = vsyncpa [#allocation3 + $0x1], 1 }

</bundles_post_ra>
